<compile_context>
chip_gen: v7x
topology: tpu7x:2x2x1
jax: 0.10.0
libtpu: 0.0.40
codegen_flags: <defaults>
</compile_context>

<pallas_src>
import functools

import jax
import jax.numpy as jnp
from jax.experimental import pallas as pl
from jax.experimental.pallas import tpu as pltpu


SUB_1 = 64
SUB_2 = 32
BN_EPS = 1e-5

# MXU input dtype (accumulation is always fp32 via preferred_element_type).
MATMUL_DTYPE = jnp.bfloat16


def _round_up(x, m):
    return (x + m - 1) // m * m


def _full_spec(shape):
    # Whole-array block resident in VMEM (all tensors here are tiny).
    return pl.BlockSpec(shape, lambda: (0,) * len(shape))


# --------------------------------------------------------------------------
# Pallas kernel
# --------------------------------------------------------------------------
def _split_enc_kernel(num_splits, alphas_ref, *refs):
    """Fused SplitEnc forward.

    refs layout: x_0..x_{S-1}, then per split (w1, b1, w2, b2, wh), then bh,
    then the single lane-padded output slab `heads` = [mean | log_var | 0pad].
    BatchNorm (eval mode) is pre-folded into w1/b1 and w2/b2.
    """
    S = num_splits
    x_refs = refs[:S]
    w_refs = refs[S:S + 5 * S]
    bh_ref = refs[6 * S]
    heads_ref = refs[6 * S + 1]

    acc = bh_ref[...]                     # (1, Hpad), broadcasts over batch
    for i in range(S):
        w1, b1, w2, b2, wh = w_refs[5 * i:5 * i + 5]
        a1 = alphas_ref[2 * i]            # PReLU scalars from SMEM
        a2 = alphas_ref[2 * i + 1]
        # Linear1 (+ folded BN1) + PReLU
        h = (jnp.dot(x_refs[i][...], w1[...],
                     preferred_element_type=jnp.float32) + b1[...])
        h = jnp.where(h > 0.0, h, a1 * h)
        # Linear2 (+ folded BN2) + PReLU
        e = (jnp.dot(h.astype(MATMUL_DTYPE), w2[...],
                     preferred_element_type=jnp.float32) + b2[...])
        e = jnp.where(e > 0.0, e, a2 * e)
        # Fused (mean | log_var) head, per-split weight slice -> accumulate
        # (avoids a lane concat of the per-split encodings).
        acc = acc + jnp.dot(e.astype(MATMUL_DTYPE), wh[...],
                            preferred_element_type=jnp.float32)
    heads_ref[...] = acc


# --------------------------------------------------------------------------
# Wrapper
# --------------------------------------------------------------------------
def split_enc_forward(params, x):
    """Mirrors SplitEnc.forward: x [B, sum(input_dim)] -> (mean, log_var)."""
    input_dim = params["input_dim"]
    z_dim = params["z_dim"]
    S = len(input_dim)
    B = x.shape[0]
    h_pad = params["bh"].shape[1]

    # torch.split(x, input_dim, dim=1), cast once for the MXU.
    xs, off = [], 0
    for n in input_dim:
        xs.append(x[:, off:off + n].astype(MATMUL_DTYPE))
        off += n

    args = [params["alphas"]]
    args += xs
    for i in range(S):
        args += [params["w1"][i], params["b1"][i],
                 params["w2"][i], params["b2"][i], params["wh"][i]]
    args.append(params["bh"])

    in_specs = [pl.BlockSpec(memory_space=pltpu.MemorySpace.SMEM)]
    in_specs += [_full_spec(a.shape) for a in args[1:]]

    flops = 2 * B * sum(n * SUB_1 + SUB_1 * SUB_2 + SUB_2 * h_pad
                        for n in input_dim)
    bytes_accessed = (sum(int(a.size) * a.dtype.itemsize for a in args)
                      + B * h_pad * 4)

    heads = pl.pallas_call(
        functools.partial(_split_enc_kernel, S),
        out_shape=jax.ShapeDtypeStruct((B, h_pad), jnp.float32),
        in_specs=in_specs,
        out_specs=_full_spec((B, h_pad)),
        cost_estimate=pl.CostEstimate(
            flops=flops, transcendentals=0, bytes_accessed=bytes_accessed),
    )(*args)

    mean = heads[:, :z_dim]
    log_var = heads[:, z_dim:2 * z_dim]
    return mean, log_var


# --------------------------------------------------------------------------
# Deterministic parameter init (matches a fresh SplitEnc in eval mode)
# --------------------------------------------------------------------------
def _xavier_uniform(key, shape):
    fan_in, fan_out = shape
    limit = (6.0 / (fan_in + fan_out)) ** 0.5
    return jax.random.uniform(key, shape, jnp.float32, -limit, limit)


def init_params(key, input_dim, z_dim):
    """Weights: xavier_uniform; Linear biases: U(-1/sqrt(fan_in), 1/sqrt(fan_in));
    BatchNorm1d: fresh (gamma=1, beta=0, running stats 0/1), folded into the
    preceding Linear (eval-mode semantics); PReLU: alpha=0.25 per layer.
    """
    # TODO(synk): training-mode BatchNorm1d (batch statistics) is not
    # implemented; eval-mode running stats are folded into the Linears.
    S = len(input_dim)
    heads_pad = _round_up(2 * z_dim, 128)
    keys = iter(jax.random.split(key, 4 * S + 4))

    def bias(k, fan_in, n):
        bound = 1.0 / (fan_in ** 0.5)
        return jax.random.uniform(k, (1, n), jnp.float32, -bound, bound)

    def fold_bn(w, b, gamma, beta, rmean, rvar):
        s = gamma / jnp.sqrt(rvar + BN_EPS)
        return w * s[None, :], b * s[None, :] + (beta - rmean * s)[None, :]

    # Fused (mean | log_var) head: (SUB_2 * S, 2*z_dim), lane-padded to 128.
    wm = _xavier_uniform(next(keys), (SUB_2 * S, z_dim))
    wv = _xavier_uniform(next(keys), (SUB_2 * S, z_dim))
    wh_full = jnp.pad(jnp.concatenate([wm, wv], axis=1),
                      ((0, 0), (0, heads_pad - 2 * z_dim)))
    bm = bias(next(keys), SUB_2 * S, z_dim)
    bv = bias(next(keys), SUB_2 * S, z_dim)
    bh = jnp.pad(jnp.concatenate([bm, bv], axis=1),
                 ((0, 0), (0, heads_pad - 2 * z_dim)))

    w1, b1, w2, b2, wh = [], [], [], [], []
    for i, n in enumerate(input_dim):
        w1_i = _xavier_uniform(next(keys), (n, SUB_1))
        b1_i = bias(next(keys), n, SUB_1)
        w2_i = _xavier_uniform(next(keys), (SUB_1, SUB_2))
        b2_i = bias(next(keys), SUB_1, SUB_2)
        # Fold eval-mode BatchNorm1d into the Linears.
        w1_i, b1_i = fold_bn(w1_i, b1_i, jnp.ones(SUB_1), jnp.zeros(SUB_1),
                             jnp.zeros(SUB_1), jnp.ones(SUB_1))
        w2_i, b2_i = fold_bn(w2_i, b2_i, jnp.ones(SUB_2), jnp.zeros(SUB_2),
                             jnp.zeros(SUB_2), jnp.ones(SUB_2))
        w1.append(w1_i.astype(MATMUL_DTYPE))
        b1.append(b1_i)                        # biases stay fp32
        w2.append(w2_i.astype(MATMUL_DTYPE))
        b2.append(b2_i)
        wh.append(wh_full[SUB_2 * i:SUB_2 * (i + 1), :].astype(MATMUL_DTYPE))

    alphas = jnp.full((2 * S,), 0.25, jnp.float32)   # PReLU scalars (SMEM)

    return {
        "input_dim": tuple(input_dim), "z_dim": int(z_dim),
        "w1": w1, "b1": b1, "w2": w2, "b2": b2,
        "wh": wh, "bh": bh, "alphas": alphas,
    }


# --------------------------------------------------------------------------
# Main
# --------------------------------------------------------------------------
if __name__ == "__main__":
    B = 2
    INPUT_DIM = (16, 24)     # two "chromosome" splits
    Z_DIM = 8

    key = jax.random.PRNGKey(0)
    k_x, k_p = jax.random.split(key)
    x = jax.random.normal(k_x, (B, sum(INPUT_DIM)), jnp.float32)
    params = init_params(k_p, INPUT_DIM, Z_DIM)

    mean, log_var = split_enc_forward(params, x)
    jax.block_until_ready((mean, log_var))

    assert mean.shape == (B, Z_DIM)
    assert log_var.shape == (B, Z_DIM)
    assert bool(jnp.all(jnp.isfinite(mean)))
    assert bool(jnp.all(jnp.isfinite(log_var)))

    print("KERNEL_OK")
</pallas_src>

<mosaic_0001>
module attributes {stable_mosaic.version = 11 : i64} {
  func.func @_split_enc_kernel(%arg0: memref<4xf32, #tpu.memory_space<smem>>, %arg1: memref<2x16xbf16, #tpu.memory_space<vmem>>, %arg2: memref<2x24xbf16, #tpu.memory_space<vmem>>, %arg3: memref<16x64xbf16, #tpu.memory_space<vmem>>, %arg4: memref<1x64xf32, #tpu.memory_space<vmem>>, %arg5: memref<64x32xbf16, #tpu.memory_space<vmem>>, %arg6: memref<1x32xf32, #tpu.memory_space<vmem>>, %arg7: memref<32x128xbf16, #tpu.memory_space<vmem>>, %arg8: memref<24x64xbf16, #tpu.memory_space<vmem>>, %arg9: memref<1x64xf32, #tpu.memory_space<vmem>>, %arg10: memref<64x32xbf16, #tpu.memory_space<vmem>>, %arg11: memref<1x32xf32, #tpu.memory_space<vmem>>, %arg12: memref<32x128xbf16, #tpu.memory_space<vmem>>, %arg13: memref<1x128xf32, #tpu.memory_space<vmem>>, %arg14: memref<2x128xf32, #tpu.memory_space<vmem>>) attributes {dimension_semantics = [], scalar_prefetch = 0 : i64, scratch_operands = 0 : i64, tpu.core_type = #tpu.core_type<tc>} {
    %c0 = arith.constant 0 : index
    %c0_0 = arith.constant 0 : index
    %0 = vector.load %arg13[%c0, %c0_0] : memref<1x128xf32, #tpu.memory_space<vmem>>, vector<1x128xf32>
    %c0_1 = arith.constant 0 : index
    %1 = memref.load %arg0[%c0_1] : memref<4xf32, #tpu.memory_space<smem>>
    %c1 = arith.constant 1 : index
    %2 = memref.load %arg0[%c1] : memref<4xf32, #tpu.memory_space<smem>>
    %c0_2 = arith.constant 0 : index
    %c0_3 = arith.constant 0 : index
    %3 = vector.load %arg1[%c0_2, %c0_3] : memref<2x16xbf16, #tpu.memory_space<vmem>>, vector<2x16xbf16>
    %c0_4 = arith.constant 0 : index
    %c0_5 = arith.constant 0 : index
    %4 = vector.load %arg3[%c0_4, %c0_5] : memref<16x64xbf16, #tpu.memory_space<vmem>>, vector<16x64xbf16>
    %cst = arith.constant dense<0.000000e+00> : vector<2x64xf32>
    %5 = tpu.matmul %3, %4, %cst {dimension_numbers = #tpu.dot_dimension_numbers<[1], [0], [0], [1], [0, 0, 1, 1], [], []>} : vector<2x16xbf16>, vector<16x64xbf16>, vector<2x64xf32> -> vector<2x64xf32>
    %c0_6 = arith.constant 0 : index
    %c0_7 = arith.constant 0 : index
    %6 = vector.load %arg4[%c0_6, %c0_7] : memref<1x64xf32, #tpu.memory_space<vmem>>, vector<1x64xf32>
    %7 = vector.broadcast %6 : vector<1x64xf32> to vector<2x64xf32>
    %8 = arith.addf %5, %7 : vector<2x64xf32>
    %cst_8 = arith.constant 0.000000e+00 : f32
    %9 = vector.broadcast %cst_8 : f32 to vector<2x64xf32>
    %10 = arith.cmpf ogt, %8, %9 : vector<2x64xf32>
    %11 = vector.broadcast %1 : f32 to vector<2x64xf32>
    %12 = arith.mulf %11, %8 : vector<2x64xf32>
    %13 = arith.select %10, %8, %12 : vector<2x64xi1>, vector<2x64xf32>
    %14 = arith.truncf %13 : vector<2x64xf32> to vector<2x64xbf16>
    %c0_9 = arith.constant 0 : index
    %c0_10 = arith.constant 0 : index
    %15 = vector.load %arg5[%c0_9, %c0_10] : memref<64x32xbf16, #tpu.memory_space<vmem>>, vector<64x32xbf16>
    %cst_11 = arith.constant dense<0.000000e+00> : vector<2x32xf32>
    %16 = tpu.matmul %14, %15, %cst_11 {dimension_numbers = #tpu.dot_dimension_numbers<[1], [0], [0], [1], [0, 0, 1, 1], [], []>} : vector<2x64xbf16>, vector<64x32xbf16>, vector<2x32xf32> -> vector<2x32xf32>
    %c0_12 = arith.constant 0 : index
    %c0_13 = arith.constant 0 : index
    %17 = vector.load %arg6[%c0_12, %c0_13] : memref<1x32xf32, #tpu.memory_space<vmem>>, vector<1x32xf32>
    %18 = vector.broadcast %17 : vector<1x32xf32> to vector<2x32xf32>
    %19 = arith.addf %16, %18 : vector<2x32xf32>
    %cst_14 = arith.constant 0.000000e+00 : f32
    %20 = vector.broadcast %cst_14 : f32 to vector<2x32xf32>
    %21 = arith.cmpf ogt, %19, %20 : vector<2x32xf32>
    %22 = vector.broadcast %2 : f32 to vector<2x32xf32>
    %23 = arith.mulf %22, %19 : vector<2x32xf32>
    %24 = arith.select %21, %19, %23 : vector<2x32xi1>, vector<2x32xf32>
    %25 = arith.truncf %24 : vector<2x32xf32> to vector<2x32xbf16>
    %c0_15 = arith.constant 0 : index
    %c0_16 = arith.constant 0 : index
    %26 = vector.load %arg7[%c0_15, %c0_16] : memref<32x128xbf16, #tpu.memory_space<vmem>>, vector<32x128xbf16>
    %cst_17 = arith.constant dense<0.000000e+00> : vector<2x128xf32>
    %27 = tpu.matmul %25, %26, %cst_17 {dimension_numbers = #tpu.dot_dimension_numbers<[1], [0], [0], [1], [0, 0, 1, 1], [], []>} : vector<2x32xbf16>, vector<32x128xbf16>, vector<2x128xf32> -> vector<2x128xf32>
    %28 = vector.broadcast %0 : vector<1x128xf32> to vector<2x128xf32>
    %29 = arith.addf %28, %27 : vector<2x128xf32>
    %c2 = arith.constant 2 : index
    %30 = memref.load %arg0[%c2] : memref<4xf32, #tpu.memory_space<smem>>
    %c3 = arith.constant 3 : index
    %31 = memref.load %arg0[%c3] : memref<4xf32, #tpu.memory_space<smem>>
    %c0_18 = arith.constant 0 : index
    %c0_19 = arith.constant 0 : index
    %32 = vector.load %arg2[%c0_18, %c0_19] : memref<2x24xbf16, #tpu.memory_space<vmem>>, vector<2x24xbf16>
    %c0_20 = arith.constant 0 : index
    %c0_21 = arith.constant 0 : index
    %33 = vector.load %arg8[%c0_20, %c0_21] : memref<24x64xbf16, #tpu.memory_space<vmem>>, vector<24x64xbf16>
    %cst_22 = arith.constant dense<0.000000e+00> : vector<2x64xf32>
    %34 = tpu.matmul %32, %33, %cst_22 {dimension_numbers = #tpu.dot_dimension_numbers<[1], [0], [0], [1], [0, 0, 1, 1], [], []>} : vector<2x24xbf16>, vector<24x64xbf16>, vector<2x64xf32> -> vector<2x64xf32>
    %c0_23 = arith.constant 0 : index
    %c0_24 = arith.constant 0 : index
    %35 = vector.load %arg9[%c0_23, %c0_24] : memref<1x64xf32, #tpu.memory_space<vmem>>, vector<1x64xf32>
    %36 = vector.broadcast %35 : vector<1x64xf32> to vector<2x64xf32>
    %37 = arith.addf %34, %36 : vector<2x64xf32>
    %cst_25 = arith.constant 0.000000e+00 : f32
    %38 = vector.broadcast %cst_25 : f32 to vector<2x64xf32>
    %39 = arith.cmpf ogt, %37, %38 : vector<2x64xf32>
    %40 = vector.broadcast %30 : f32 to vector<2x64xf32>
    %41 = arith.mulf %40, %37 : vector<2x64xf32>
    %42 = arith.select %39, %37, %41 : vector<2x64xi1>, vector<2x64xf32>
    %43 = arith.truncf %42 : vector<2x64xf32> to vector<2x64xbf16>
    %c0_26 = arith.constant 0 : index
    %c0_27 = arith.constant 0 : index
    %44 = vector.load %arg10[%c0_26, %c0_27] : memref<64x32xbf16, #tpu.memory_space<vmem>>, vector<64x32xbf16>
    %cst_28 = arith.constant dense<0.000000e+00> : vector<2x32xf32>
    %45 = tpu.matmul %43, %44, %cst_28 {dimension_numbers = #tpu.dot_dimension_numbers<[1], [0], [0], [1], [0, 0, 1, 1], [], []>} : vector<2x64xbf16>, vector<64x32xbf16>, vector<2x32xf32> -> vector<2x32xf32>
    %c0_29 = arith.constant 0 : index
    %c0_30 = arith.constant 0 : index
    %46 = vector.load %arg11[%c0_29, %c0_30] : memref<1x32xf32, #tpu.memory_space<vmem>>, vector<1x32xf32>
    %47 = vector.broadcast %46 : vector<1x32xf32> to vector<2x32xf32>
    %48 = arith.addf %45, %47 : vector<2x32xf32>
    %cst_31 = arith.constant 0.000000e+00 : f32
    %49 = vector.broadcast %cst_31 : f32 to vector<2x32xf32>
    %50 = arith.cmpf ogt, %48, %49 : vector<2x32xf32>
    %51 = vector.broadcast %31 : f32 to vector<2x32xf32>
    %52 = arith.mulf %51, %48 : vector<2x32xf32>
    %53 = arith.select %50, %48, %52 : vector<2x32xi1>, vector<2x32xf32>
    %54 = arith.truncf %53 : vector<2x32xf32> to vector<2x32xbf16>
    %c0_32 = arith.constant 0 : index
    %c0_33 = arith.constant 0 : index
    %55 = vector.load %arg12[%c0_32, %c0_33] : memref<32x128xbf16, #tpu.memory_space<vmem>>, vector<32x128xbf16>
    %cst_34 = arith.constant dense<0.000000e+00> : vector<2x128xf32>
    %56 = tpu.matmul %54, %55, %cst_34 {dimension_numbers = #tpu.dot_dimension_numbers<[1], [0], [0], [1], [0, 0, 1, 1], [], []>} : vector<2x32xbf16>, vector<32x128xbf16>, vector<2x128xf32> -> vector<2x128xf32>
    %57 = arith.addf %29, %56 : vector<2x128xf32>
    %c0_35 = arith.constant 0 : index
    %c0_36 = arith.constant 0 : index
    %58 = vector.load %arg14[%c0_35, %c0_36] : memref<2x128xf32, #tpu.memory_space<vmem>>, vector<2x128xf32>
    tpu.vector_store %arg14[%c0_35, %c0_36], %57 {strides = array<i32>} : memref<2x128xf32, #tpu.memory_space<vmem>>, vector<2x128xf32>,
    return
  }
}

</mosaic_0001>

<bundles_post_ra>
// kernel: tpu_custom_call.1
= control target key start
LH: loop header
LB: loop body
LE: loop exit
PB: predicated region body
PF: predicated region fallthrough
CT: control target
= control target key end

     0   :  { %19 = vsyncpa [#allocation4], 0  ;;  %s880_s0 = inlined_call_operand.vmem [shape: f32[4], index: 0, kind: input, shape index: {}]   ;;  %s881_s1 = inlined_call_operand.vmem [shape: bf16[2,16], index: 1, kind: input, shape index: {}]   ;;  %s882_s2 = inlined_call_operand.vmem [shape: bf16[2,24], index: 2, kind: input, shape index: {}]   ;;  %s883_s3 = inlined_call_operand.vmem [shape: bf16[16,64], index: 3, kind: input, shape index: {}]   ;;  %s884_s4 = inlined_call_operand.vmem [shape: f32[1,64], index: 4, kind: input, shape index: {}]   ;;  %s885_s5 = inlined_call_operand.vmem [shape: bf16[64,32], index: 5, kind: input, shape index: {}]   ;;  %s886_s6 = inlined_call_operand.vmem [shape: f32[1,32], index: 6, kind: input, shape index: {}]   ;;  %s887_s7 = inlined_call_operand.vmem [shape: bf16[32,128], index: 7, kind: input, shape index: {}]   ;;  %s888_s8 = inlined_call_operand.vmem [shape: bf16[24,64], index: 8, kind: input, shape index: {}]   ;;  %s889_s9 = inlined_call_operand.vmem [shape: f32[1,64], index: 9, kind: input, shape index: {}]   ;;  %s890_s10 = inlined_call_operand.vmem [shape: bf16[64,32], index: 10, kind: input, shape index: {}]   ;;  %s891_s11 = inlined_call_operand.vmem [shape: f32[1,32], index: 11, kind: input, shape index: {}]   ;;  %s892_s12 = inlined_call_operand.vmem [shape: bf16[32,128], index: 12, kind: input, shape index: {}]   ;;  %s893_s13 = inlined_call_operand.vmem [shape: f32[1,128], index: 13, kind: input, shape index: {}]   ;;  %s894_s14 = inlined_call_operand.hbm [shape: f32[2,128], index: 14, kind: output, shape index: {}]  }
   0x1   :  { %20 = vsyncpa [#allocation3], 0  ;;  %s27_s15 = sshll.u32 %s880_s0, 4  ;;  %s28_s15 = int_to_ptr.vmem [resolvable:$true] %s27_s15 }
   0x2   :  { %s651_s16 = scalar_lea.vmem %s28_s15, 16  ;;  %p656_p1 = scmp.lt.s32.totalorder %s28_s15, %s28_s15 }
   0x3   :  { %p652_p0 = scmp.ne.s32.totalorder %s28_s15, %s651_s16  ;;  %p657_p2 = scmp.lt.s32.totalorder %s651_s16, %s651_s16 }
   0x5   :  { %p658_p3 = por %p657_p2, %p656_p1 }
   0x7   :  { %p659_p4 = pnand %p658_p3, %p652_p0 }
   0x9   :  { %662 = shalt.err (!%p659_p4)
}
   0xa   :  { %s689_s17 = smov [#allocation2]  }
   0xb   :  { %30 = dma.vmem_to_smem %s28_s15, 16, %s689_s17, [#allocation4]  }
   0xc   :  { %685 = dma.done.wait [#allocation4], 16  }
   0xd   :  { %686 = vsyncadd [#allocation4], 4294967280 }
   0xe   :  { %60 = sfence }
   0xf   :  { %v636_v0 = vld [vmem:[%s883_s3] sm:$0xff]   ;;  %v690_v1 = vmov 0.0   ;;  %vm691_vm0 = vmmov 0   ;;  %vm81_vm1 = vcmask 130048   ;;  %v638_v4 = vld [vmem:[%s885_s5 + $0x8] sm:$0xff]   ;;  %v639_v5 = vld [vmem:[%s885_s5 + $0x10] sm:$0xff]  }
  0x10   :  { %573 = vmatprep.subr.bf16.mxu0 %v690_v1  ;;  %v65_v2 = vld [vmem:[%s881_s1] sm:$0x1]  ;;  %579 = vmatprep.subr.bf16.mxu1 %v690_v1  ;;  %v640_v6 = vld [vmem:[%s885_s5 + $0x18] sm:$0xff]   ;;  %s63_s27 = sld [smem:[#allocation2]]  ;;  %vm169_vm3 = vcmask 523264   ;;  %v642_v18 = vld [vmem:[%s887_s7 + $0x8] sm:$0xff]  }
  0x11   :  { %574 = vmatpush3.bf16.msra.mxu0 %v636_v0  ;;  %575 = vmatprep.mubr.msk.bf16.mxu0 %vm691_vm0, %v690_v1  ;;  %v637_v3 = vld [vmem:[%s885_s5] sm:$0xff]   ;;  %v646_v20 = vld [vmem:[%s890_s10 + $0x8] sm:$0xff]   ;;  %s523_s0 = sld [smem:[#allocation2 + $0x1]]  ;;  %vm234_vm5 = vcmask 261120   ;;  %vm311_vm6 = vcmask 1043456   ;;  %vm307_vm7 = vcmask 195584  }
  0x12   :  { %587 = vmatprep.mubr.msk.bf16.mxu1 %vm691_vm0, %v690_v1  ;;  %591 = vmatprep.subr.bf16.mxu0 %v690_v1  ;;  %v524_v7 = vld [vmem:[%s884_s4] ss:$0 sm:$0xff]  ;;  %v644_v32 = vld [vmem:[%s888_s8 + $0x8] ss:$0 sps:$4 sm:$0xff]   ;;  %v647_v35 = vld [vmem:[%s890_s10 + $0x10] sm:$0xff]   ;;  %s538_s30 = sld [smem:[#allocation2 + $0x3]] }
  0x13   :  { %580 = vmatpush3.bf16.msra.mxu1 %v637_v3  ;;  %v641_v17 = vld [vmem:[%s887_s7] sm:$0xff]   ;;  %v313_v33 = vsel %vm311_vm6, %v644_v32, 0  ;;  %v648_v36 = vld [vmem:[%s890_s10 + $0x18] sm:$0xff]   ;;  %v650_v48 = vld [vmem:[%s892_s12 + $0x8] sm:$0xff]   ;;  %s692_s17 = smov [#allocation5]  }
  0x14   :  { %576 = vmatmul.mubr.msk.bf16.vlgmr.msra.gmra.mrb[0].mxu0 %vm81_vm1, %v65_v2  ;;  %581 = vmatprep.subr.bf16.mxu1 %v690_v1  ;;  %v645_v19 = vld [vmem:[%s890_s10] sm:$0xff]   ;;  %s514_s18 = sshll.u32 %s692_s17, 4  ;;  %s515_s18 = int_to_ptr.vmem [resolvable:$true] %s514_s18 }
  0x15   :  { %595 = vmatprep.mubr.msk.bf16.mxu0 %vm691_vm0, %v690_v1  ;;  %592 = vmatpush3.bf16.msra.mxu0 %v641_v17  ;;  %v527_v21 = vld [vmem:[%s886_s6] ss:$0 sm:$0xff]  ;;  %p668_p6 = scmp.lt.s32.totalorder %s515_s18, %s515_s18 }
  0x16   :  { %v126_v9 = vstv %s63_s27  ;;  %593 = vmatprep.subr.bf16.mxu0 %v690_v1  ;;  %v643_v30 = vld [vmem:[%s888_s8] sm:$0xff]  }
  0x17   :  { %582 = vmatpush3.bf16.msra.mxu1 %v638_v4  ;;  %v214_v23 = vstv %s523_s0  ;;  %v287_v34 = vld [vmem:[%s882_s2] sm:$0x1]  ;;  %s537_s2 = sld [smem:[#allocation2 + $0x2]] }
  0x18   :  { %583 = vmatprep.subr.bf16.mxu1 %v690_v1  ;;  %v539_v37 = vld [vmem:[%s889_s9] ss:$0 sm:$0xff]  ;;  %v443_v51 = vstv %s538_s30 }
  0x19   :  { %594 = vmatpush3.bf16.msra.mxu0 %v642_v18  ;;  %v649_v47 = vld [vmem:[%s892_s12] sm:$0xff]  }
  0x1a   :  { %599 = vmatprep.subr.bf16.mxu0 %v690_v1  ;;  %v543_v49 = vld [vmem:[%s891_s11] ss:$0 sm:$0xff]  ;;  %s663_s11 = scalar_lea.vmem %s515_s18, 32 }
  0x1b   :  { %584 = vmatpush3.bf16.msra.mxu1 %v639_v5  ;;  %v536_v59 = vld [vmem:[%s893_s13] ss:$0 sm:$0xff]  ;;  %p664_p5 = scmp.ne.s32.totalorder %s515_s18, %s663_s11  ;;  %p669_p7 = scmp.lt.s32.totalorder %s663_s11, %s663_s11 }
  0x1c   :  { %585 = vmatprep.subr.bf16.mxu1 %v690_v1 }
  0x1d   :  { %v356_v39 = vstv %s537_s2  ;;  %p670_p8 = por %p669_p7, %p668_p6 }
  0x1f   :  { %586 = vmatpush3.bf16.msra.mxu1 %v640_v6  ;;  %p671_p9 = pnand %p670_p8, %p664_p5 }
  0x20   :  { %607 = vmatprep.subr.bf16.mxu1 %v690_v1 }
  0xe7   :  { %v119_v8 = vpop.f32.mrb[0].mxu0 }
  0xe8   :  { %v120_v10 = vadd.f32 %v524_v7, %v119_v8  ;;  %v577_v11 = vpop.f32.mrb[1].mxu0 }
  0xe9   :  { %v122_v12 = vpop.f32.mrb[2].mxu0 }
  0xea   :  { %vm125_vm2 = vcmp.gt.f32.partialorder %v120_v10, 0.0  ;;  %v127_v13 = vmul.f32 %v126_v9, %v120_v10  ;;  %v578_v14 = vpop.f32.mrb[3].mxu0 }
  0xec   :  { %v128_v15 = vsel %vm125_vm2, %v120_v10, %v127_v13 }
  0xed   :  { %v129_v16 = vpack.c.bf16 %v128_v15, %v128_v15 }
  0xef   :  { %588 = vmatmul.mubr.msk.bf16.vlgmr.msra.gmra.mrb[0].mxu1 %vm169_vm3, %v129_v16 }
  0xf0   :  { %615 = vmatprep.mubr.msk.bf16.mxu1 %vm691_vm0, %v690_v1  ;;  %608 = vmatpush3.bf16.msra.mxu1 %v645_v19 }
  0xf1   :  { %609 = vmatprep.subr.bf16.mxu1 %v690_v1 }
  0xf4   :  { %610 = vmatpush3.bf16.msra.mxu1 %v646_v20 }
  0xf5   :  { %611 = vmatprep.subr.bf16.mxu1 %v690_v1 }
  0xf8   :  { %612 = vmatpush3.bf16.msra.mxu1 %v647_v35 }
  0xf9   :  { %613 = vmatprep.subr.bf16.mxu1 %v690_v1 }
  0xfc   :  { %614 = vmatpush3.bf16.msra.mxu1 %v648_v36 }
 0x1c2   :  { %v207_v22 = vpop.f32.mrb[0].mxu1 }
 0x1c3   :  { %v208_v24 = vadd.f32 %v527_v21, %v207_v22  ;;  %v589_v25 = vpop.f32.mrb[1].mxu1 }
 0x1c4   :  { %v210_v26 = vpop.f32.mrb[2].mxu1 }
 0x1c5   :  { %vm213_vm4 = vcmp.gt.f32.partialorder %v208_v24, 0.0  ;;  %v215_v27 = vmul.f32 %v214_v23, %v208_v24  ;;  %v590_v28 = vpop.f32.mrb[3].mxu1 }
 0x1c7   :  { %v216_v29 = vsel %vm213_vm4, %v208_v24, %v215_v27 }
 0x1c8   :  { %v217_v31 = vpack.c.bf16 %v216_v29, %v216_v29 }
 0x1ca   :  { %596 = vmatmul.mubr.msk.bf16.vlgmr.msra.gmra.mrb[4].mxu0 %vm234_vm5, %v217_v31 }
 0x1cb   :  { %600 = vmatpush3.bf16.msra.mxu0 %v643_v30  ;;  %603 = vmatprep.mubr.msk.bf16.mxu0 %vm691_vm0, %v690_v1 }
 0x1cc   :  { %601 = vmatprep.subr.bf16.mxu0 %v690_v1 }
 0x1cf   :  { %602 = vmatpush3.bf16.msra.mxu0 %v313_v33 }
 0x1d0   :  { %619 = vmatprep.subr.bf16.mxu0 %v690_v1 }
 0x1d2   :  { %604 = vmatmul.mubr.msk.bf16.vlgmr.msra.gmra.mrb[8].mxu0 %vm307_vm7, %v287_v34 }
 0x1d3   :  { %623 = vmatprep.mubr.msk.bf16.mxu0 %vm691_vm0, %v690_v1  ;;  %620 = vmatpush3.bf16.msra.mxu0 %v649_v47 }
 0x1d4   :  { %621 = vmatprep.subr.bf16.mxu0 %v690_v1 }
 0x1d7   :  { %622 = vmatpush3.bf16.msra.mxu0 %v650_v48 }
 0x2a5   :  { %v349_v38 = vpop.f32.mrb[8].mxu0 }
 0x2a6   :  { %v350_v40 = vadd.f32 %v539_v37, %v349_v38  ;;  %v605_v41 = vpop.f32.mrb[9].mxu0 }
 0x2a7   :  { %v352_v42 = vpop.f32.mrb[10].mxu0 }
 0x2a8   :  { %vm355_vm8 = vcmp.gt.f32.partialorder %v350_v40, 0.0  ;;  %v357_v43 = vmul.f32 %v356_v39, %v350_v40  ;;  %v606_v44 = vpop.f32.mrb[11].mxu0 }
 0x2aa   :  { %v358_v45 = vsel %vm355_vm8, %v350_v40, %v357_v43 }
 0x2ab   :  { %v359_v46 = vpack.c.bf16 %v358_v45, %v358_v45 }
 0x2ad   :  { %616 = vmatmul.mubr.msk.bf16.vlgmr.msra.gmra.mrb[4].mxu1 %vm169_vm3, %v359_v46 }
 0x380   :  { %v436_v50 = vpop.f32.mrb[4].mxu1 }
 0x381   :  { %v437_v52 = vadd.f32 %v543_v49, %v436_v50  ;;  %v617_v53 = vpop.f32.mrb[5].mxu1 }
 0x382   :  { %v439_v54 = vpop.f32.mrb[6].mxu1 }
 0x383   :  { %vm442_vm9 = vcmp.gt.f32.partialorder %v437_v52, 0.0  ;;  %v444_v55 = vmul.f32 %v443_v51, %v437_v52  ;;  %v618_v56 = vpop.f32.mrb[7].mxu1 }
 0x385   :  { %v445_v57 = vsel %vm442_vm9, %v437_v52, %v444_v55 }
 0x386   :  { %v446_v58 = vpack.c.bf16 %v445_v57, %v445_v57 }
 0x388   :  { %624 = vmatmul.mubr.msk.bf16.vlgmr.msra.gmra.mrb[4].mxu0 %vm234_vm5, %v446_v58 }
 0x45b   :  { %v500_v60 = vpop.f32.mrb[4].mxu0 }
 0x45c   :  { %v627_v61 = vadd.f32 %v536_v59, %v500_v60  ;;  %v625_v62 = vpop.f32.mrb[5].mxu0 }
 0x45d   :  { %v503_v63 = vpop.f32.mrb[6].mxu0 }
 0x45e   :  { %507 = vst [vmem:[#allocation5] sm:$0x3] %v627_v61  ;;  %v626_v0 = vpop.f32.mrb[7].mxu0 }
 0x45f   :  { %674 = shalt.err (!%p671_p9)
}
 0x460   :  { %s675_s13 = scalar_lea.hbm %s894_s14, 32 }
 0x461   :  { %p676_p10 = scmp.ne.s32.totalorder %s894_s14, %s675_s13  ;;  %p679_p11 = scmp.lt.u32.totalorder %s675_s13, %s894_s14 }
 0x463   :  { %p681_p12 = pnand %p679_p11, %p676_p10 }
 0x465   :  { %684 = shalt.err (!%p681_p12)
}
 0x466   :  { %517 = dma.vmem_to_hbm [thread:$0]  %s515_s18, 32, %s894_s14, [#allocation3]  }
 0x467   :  { %687 = dma.done.wait [#allocation3], 32  }
 0x468   :  { %688 = vsyncadd [#allocation3], 4294967264 }
 0x469   :  { %521 = vsyncpa [#allocation3], 1 }
 0x46a   :  { %522 = vsyncpa [#allocation4], 1 }

</bundles_post_ra>
